<compile_context>
chip_gen: v7x
topology: tpu7x:2x2x1
jax: 0.10.0
libtpu: 0.0.40
codegen_flags: <defaults>
</compile_context>

<pallas_src>
import functools

import jax
import jax.numpy as jnp
from jax import lax
from jax.experimental import pallas as pl
from jax.experimental.pallas import tpu as pltpu


# ----------------------------------------------------------------------------
# Fused kernel: per (batch, node-chunk) block compute
#   out[:k_space]  = W_space @ Z_block[F, TN*T]                    (space)
#   out[k_space:]  = sum_dk W_time[dk] @ shift_dk(X_block[F, TN*T]) (time conv)
# where X_block is the PyTorch Z.view(B*N, F, T) ordering regrouped so the
# lane axis is n*T + tau (same column layout as the space part / the output).
# ----------------------------------------------------------------------------
def _seton_kernel(zs_ref, zt_ref, ws_ref, wt_ref, mask_ref, o_ref, xb_ref, *,
                  F, T, TN, t_kernel, k_space, k_time):
    NT = TN * T
    pad = t_kernel // 2

    # ---- space embedding: [k_space, F] @ [F, TN*T]  (lane-dense output) ----
    a = zs_ref[0]                                          # [F, TN*T]
    s = jnp.dot(ws_ref[...], a, preferred_element_type=jnp.float32)
    o_ref[0, :k_space, :] = s.astype(o_ref.dtype)

    # ---- time embedding (Conv1d, 'same' padding, no bias) ----
    # zt block rows follow the raw PyTorch view order r = n*F + f.
    # Regroup into xb[f, n*T + tau] = X[n, f, tau] using only static slice
    # copies into a VMEM scratch (no in-kernel relayout/transpose ops).
    d = zt_ref[0]                                          # [TN*F, T]
    for nl in range(TN):                                   # static unroll
        xb_ref[:, nl * T:(nl + 1) * T] = d[nl * F:(nl + 1) * F, :]
    # TODO(synk): for very large node blocks switch this copy loop to
    # lax.fori_loop with pl.ds to avoid code bloat.
    xb = xb_ref[...]                                       # [F, TN*T]

    acc = jnp.zeros((k_time, NT), jnp.float32)
    for dk in range(t_kernel):                             # static taps
        sft = dk - pad
        if sft == 0:
            xs = xb
        elif sft > 0:
            xs = jnp.concatenate(
                [xb[:, sft:], jnp.zeros((F, sft), xb.dtype)], axis=1)
        else:
            xs = jnp.concatenate(
                [jnp.zeros((F, -sft), xb.dtype), xb[:, :sft]], axis=1)
        # zero lanes whose shifted tau falls outside [0, T) (per-node halo)
        xs = xs * mask_ref[dk]                             # [1, NT] bcast
        acc = acc + jnp.dot(wt_ref[dk], xs,
                            preferred_element_type=jnp.float32)
    o_ref[0, k_space:, :] = acc.astype(o_ref.dtype)


# ----------------------------------------------------------------------------
# Wrapper
# ----------------------------------------------------------------------------
def seton_forward(Z, w_space, w_time, *, max_block_lanes=16384):
    """Z: [B, F, N, T]
       w_space: [k_space, in_f]      (PyTorch nn.Linear weight layout)
       w_time : [k_time, in_f, t_k]  (PyTorch nn.Conv1d weight layout)
       returns E: [B, k_space + k_time, N, T]
    """
    B, F, N, T = Z.shape
    k_space = w_space.shape[0]
    k_time, _, t_kernel = w_time.shape
    K = k_space + k_time
    pad = t_kernel // 2

    # nodes-per-block: whole N if it fits the lane budget, else the largest
    # divisor whose block stays (8,128)-tileable and VMEM friendly.
    TN = N
    if N * T > max_block_lanes:
        for cand in range(N - 1, 0, -1):
            if N % cand:
                continue
            if cand * T > max_block_lanes:
                continue
            if (cand * T) % 128 == 0 and (cand * F) % 8 == 0:
                TN = cand
                break
        # TODO(synk): if no suitable divisor exists we fall back to the whole
        # batch slab, which may need a larger vmem_limit for huge N*T.

    # Two flat-order-preserving (free) reshapes of the same buffer:
    z_sp = Z.reshape(B, F, N * T)      # channels-major view (space matmul)
    z_tm = Z.reshape(B, F * N, T)      # raw rows: PyTorch Z.view(B*N, F, T)

    # Conv weights as per-tap [k_time, F] matrices (tiny transpose).
    w_taps = jnp.transpose(w_time, (2, 0, 1))              # [t_k, k_time, F]

    # Halo mask: mask[dk, 0, n*T+tau] = 1 iff 0 <= tau + (dk - pad) < T.
    tau = jnp.arange(TN * T, dtype=jnp.int32) % T
    mask = jnp.stack(
        [((tau + (dk - pad) >= 0) & (tau + (dk - pad) < T)).astype(Z.dtype)
         for dk in range(t_kernel)], axis=0)[:, None, :]   # [t_k, 1, TN*T]

    grid = (B, N // TN)
    kern = functools.partial(_seton_kernel, F=F, T=T, TN=TN,
                             t_kernel=t_kernel, k_space=k_space, k_time=k_time)

    out = pl.pallas_call(
        kern,
        out_shape=jax.ShapeDtypeStruct((B, K, N * T), Z.dtype),
        grid=grid,
        in_specs=[
            pl.BlockSpec((1, F, TN * T), lambda b, j: (b, 0, j)),
            pl.BlockSpec((1, TN * F, T), lambda b, j: (b, j, 0)),
            pl.BlockSpec((k_space, F), lambda b, j: (0, 0)),
            pl.BlockSpec((t_kernel, k_time, F), lambda b, j: (0, 0, 0)),
            pl.BlockSpec((t_kernel, 1, TN * T), lambda b, j: (0, 0, 0)),
        ],
        out_specs=pl.BlockSpec((1, K, TN * T), lambda b, j: (b, 0, j)),
        scratch_shapes=[pltpu.VMEM((F, TN * T), Z.dtype)],
        compiler_params=pltpu.CompilerParams(
            dimension_semantics=("parallel", "parallel")),
    )(z_sp, z_tm, w_space, w_taps, mask)

    return out.reshape(B, K, N, T)     # free split of the lane dim


# ----------------------------------------------------------------------------
# Pure-JAX reference (mirrors the PyTorch module exactly; correctness check)
# ----------------------------------------------------------------------------
def seton_reference(Z, w_space, w_time):
    B, F, N, T = Z.shape
    k_time, _, t_k = w_time.shape
    s = jnp.einsum("bntf,kf->bntk", jnp.transpose(Z, (0, 2, 3, 1)), w_space)
    x = Z.reshape(B * N, F, T)         # same raw-view semantics as torch .view
    t = lax.conv_general_dilated(
        x, w_time,
        window_strides=(1,),
        padding=((t_k // 2, t_k // 2),),
        dimension_numbers=("NCH", "OIH", "NCH"),
    )
    t = jnp.transpose(t.reshape(B, N, k_time, T), (0, 1, 3, 2))
    E = jnp.concatenate([s, t], axis=-1)
    return jnp.transpose(E, (0, 3, 1, 2))


if __name__ == "__main__":
    # Small shapes consistent with the module: Z is [B, F, N, T]
    B, in_f, N, T = 2, 4, 8, 16
    k_space, k_time, t_kernel = 16, 16, 3

    key = jax.random.PRNGKey(0)
    kz, kw1, kw2 = jax.random.split(key, 3)
    Z = jax.random.normal(kz, (B, in_f, N, T), dtype=jnp.float32)
    # Deterministic synthetic weights in the PyTorch layouts.
    w_space = jax.random.normal(kw1, (k_space, in_f), dtype=jnp.float32) * 0.1
    w_time = jax.random.normal(kw2, (k_time, in_f, t_kernel),
                               dtype=jnp.float32) * 0.1

    E = jax.block_until_ready(seton_forward(Z, w_space, w_time))
    E_ref = jax.block_until_ready(seton_reference(Z, w_space, w_time))

    assert E.shape == (B, k_space + k_time, N, T), E.shape
    assert jnp.allclose(E, E_ref, atol=1e-5, rtol=1e-5), float(
        jnp.max(jnp.abs(E - E_ref)))

    print("KERNEL_OK")
</pallas_src>

<mosaic_0001>
module attributes {stable_mosaic.version = 11 : i64} {
  func.func @_seton_kernel(%arg0: i32, %arg1: i32, %arg2: memref<1x4x128xf32, #tpu.memory_space<vmem>>, %arg3: memref<1x32x16xf32, #tpu.memory_space<vmem>>, %arg4: memref<16x4xf32, #tpu.memory_space<vmem>>, %arg5: memref<3x16x4xf32, #tpu.memory_space<vmem>>, %arg6: memref<3x1x128xf32, #tpu.memory_space<vmem>>, %arg7: memref<1x32x128xf32, #tpu.memory_space<vmem>>, %arg8: memref<4x128xf32, #tpu.memory_space<vmem>>) attributes {dimension_semantics = [#tpu.dimension_semantics<parallel>, #tpu.dimension_semantics<parallel>], iteration_bounds = array<i64: 2, 1>, scalar_prefetch = 0 : i64, scratch_operands = 1 : i64, tpu.core_type = #tpu.core_type<tc>, window_params = [{transform_indices = @transform_0, window_bounds = array<i64: 1, 4, 128>}, {transform_indices = @transform_1, window_bounds = array<i64: 1, 32, 16>}, {pipeline_mode = #tpu.pipeline_mode<synchronous>, transform_indices = @transform_2, window_bounds = array<i64: 16, 4>}, {pipeline_mode = #tpu.pipeline_mode<synchronous>, transform_indices = @transform_3, window_bounds = array<i64: 3, 16, 4>}, {pipeline_mode = #tpu.pipeline_mode<synchronous>, transform_indices = @transform_4, window_bounds = array<i64: 3, 1, 128>}, {transform_indices = @transform_5, window_bounds = array<i64: 1, 32, 128>}]} {
    %c0 = arith.constant 0 : index
    %c0_0 = arith.constant 0 : index
    %c0_1 = arith.constant 0 : index
    %0 = vector.load %arg2[%c0, %c0_0, %c0_1] : memref<1x4x128xf32, #tpu.memory_space<vmem>>, vector<1x4x128xf32>
    %1 = vector.shape_cast %0 : vector<1x4x128xf32> to vector<4x128xf32>
    %c0_2 = arith.constant 0 : index
    %c0_3 = arith.constant 0 : index
    %2 = vector.load %arg4[%c0_2, %c0_3] : memref<16x4xf32, #tpu.memory_space<vmem>>, vector<16x4xf32>
    %cst = arith.constant dense<0.000000e+00> : vector<16x128xf32>
    %3 = tpu.matmul %2, %1, %cst {dimension_numbers = #tpu.dot_dimension_numbers<[1], [0], [0], [1], [0, 0, 1, 1], [], []>} : vector<16x4xf32>, vector<4x128xf32>, vector<16x128xf32> -> vector<16x128xf32>
    %c0_4 = arith.constant 0 : index
    %c0_5 = arith.constant 0 : index
    %c0_6 = arith.constant 0 : index
    %4 = vector.load %arg7[%c0_4, %c0_5, %c0_6] : memref<1x32x128xf32, #tpu.memory_space<vmem>>, vector<1x16x128xf32>
    %5 = vector.shape_cast %4 : vector<1x16x128xf32> to vector<16x128xf32>
    %6 = vector.shape_cast %3 : vector<16x128xf32> to vector<1x16x128xf32>
    tpu.vector_store %arg7[%c0_4, %c0_5, %c0_6], %6 {strides = array<i32>} : memref<1x32x128xf32, #tpu.memory_space<vmem>>, vector<1x16x128xf32>,
    %c0_7 = arith.constant 0 : index
    %c0_8 = arith.constant 0 : index
    %c0_9 = arith.constant 0 : index
    %7 = vector.load %arg3[%c0_7, %c0_8, %c0_9] : memref<1x32x16xf32, #tpu.memory_space<vmem>>, vector<1x32x16xf32>
    %8 = vector.shape_cast %7 : vector<1x32x16xf32> to vector<32x16xf32>
    %9 = vector.extract_strided_slice %8 {offsets = [0, 0], sizes = [4, 16], strides = [1, 1]} : vector<32x16xf32> to vector<4x16xf32>
    %c0_10 = arith.constant 0 : index
    %c0_11 = arith.constant 0 : index
    %10 = vector.load %arg8[%c0_10, %c0_11] : memref<4x128xf32, #tpu.memory_space<vmem>>, vector<4x16xf32>
    tpu.vector_store %arg8[%c0_10, %c0_11], %9 {strides = array<i32>} : memref<4x128xf32, #tpu.memory_space<vmem>>, vector<4x16xf32>,
    %11 = vector.extract_strided_slice %8 {offsets = [4, 0], sizes = [4, 16], strides = [1, 1]} : vector<32x16xf32> to vector<4x16xf32>
    %c0_12 = arith.constant 0 : index
    %c16 = arith.constant 16 : index
    %12 = vector.load %arg8[%c0_12, %c16] : memref<4x128xf32, #tpu.memory_space<vmem>>, vector<4x16xf32>
    tpu.vector_store %arg8[%c0_12, %c16], %11 {strides = array<i32>} : memref<4x128xf32, #tpu.memory_space<vmem>>, vector<4x16xf32>,
    %13 = vector.extract_strided_slice %8 {offsets = [8, 0], sizes = [4, 16], strides = [1, 1]} : vector<32x16xf32> to vector<4x16xf32>
    %c0_13 = arith.constant 0 : index
    %c32 = arith.constant 32 : index
    %14 = vector.load %arg8[%c0_13, %c32] : memref<4x128xf32, #tpu.memory_space<vmem>>, vector<4x16xf32>
    tpu.vector_store %arg8[%c0_13, %c32], %13 {strides = array<i32>} : memref<4x128xf32, #tpu.memory_space<vmem>>, vector<4x16xf32>,
    %15 = vector.extract_strided_slice %8 {offsets = [12, 0], sizes = [4, 16], strides = [1, 1]} : vector<32x16xf32> to vector<4x16xf32>
    %c0_14 = arith.constant 0 : index
    %c48 = arith.constant 48 : index
    %16 = vector.load %arg8[%c0_14, %c48] : memref<4x128xf32, #tpu.memory_space<vmem>>, vector<4x16xf32>
    tpu.vector_store %arg8[%c0_14, %c48], %15 {strides = array<i32>} : memref<4x128xf32, #tpu.memory_space<vmem>>, vector<4x16xf32>,
    %17 = vector.extract_strided_slice %8 {offsets = [16, 0], sizes = [4, 16], strides = [1, 1]} : vector<32x16xf32> to vector<4x16xf32>
    %c0_15 = arith.constant 0 : index
    %c64 = arith.constant 64 : index
    %18 = vector.load %arg8[%c0_15, %c64] : memref<4x128xf32, #tpu.memory_space<vmem>>, vector<4x16xf32>
    tpu.vector_store %arg8[%c0_15, %c64], %17 {strides = array<i32>} : memref<4x128xf32, #tpu.memory_space<vmem>>, vector<4x16xf32>,
    %19 = vector.extract_strided_slice %8 {offsets = [20, 0], sizes = [4, 16], strides = [1, 1]} : vector<32x16xf32> to vector<4x16xf32>
    %c0_16 = arith.constant 0 : index
    %c80 = arith.constant 80 : index
    %20 = vector.load %arg8[%c0_16, %c80] : memref<4x128xf32, #tpu.memory_space<vmem>>, vector<4x16xf32>
    tpu.vector_store %arg8[%c0_16, %c80], %19 {strides = array<i32>} : memref<4x128xf32, #tpu.memory_space<vmem>>, vector<4x16xf32>,
    %21 = vector.extract_strided_slice %8 {offsets = [24, 0], sizes = [4, 16], strides = [1, 1]} : vector<32x16xf32> to vector<4x16xf32>
    %c0_17 = arith.constant 0 : index
    %c96 = arith.constant 96 : index
    %22 = vector.load %arg8[%c0_17, %c96] : memref<4x128xf32, #tpu.memory_space<vmem>>, vector<4x16xf32>
    tpu.vector_store %arg8[%c0_17, %c96], %21 {strides = array<i32>} : memref<4x128xf32, #tpu.memory_space<vmem>>, vector<4x16xf32>,
    %23 = vector.extract_strided_slice %8 {offsets = [28, 0], sizes = [4, 16], strides = [1, 1]} : vector<32x16xf32> to vector<4x16xf32>
    %c0_18 = arith.constant 0 : index
    %c112 = arith.constant 112 : index
    %24 = vector.load %arg8[%c0_18, %c112] : memref<4x128xf32, #tpu.memory_space<vmem>>, vector<4x16xf32>
    tpu.vector_store %arg8[%c0_18, %c112], %23 {strides = array<i32>} : memref<4x128xf32, #tpu.memory_space<vmem>>, vector<4x16xf32>,
    %c0_19 = arith.constant 0 : index
    %c0_20 = arith.constant 0 : index
    %25 = vector.load %arg8[%c0_19, %c0_20] : memref<4x128xf32, #tpu.memory_space<vmem>>, vector<4x128xf32>
    %cst_21 = arith.constant 0.000000e+00 : f32
    %26 = vector.broadcast %cst_21 : f32 to vector<16x128xf32>
    %cst_22 = arith.constant 0.000000e+00 : f32
    %27 = vector.broadcast %cst_22 : f32 to vector<4x1xf32>
    %28 = vector.extract_strided_slice %25 {offsets = [0, 0], sizes = [4, 127], strides = [1, 1]} : vector<4x128xf32> to vector<4x127xf32>
    %29 = tpu.concatenate %27, %28 in 1 : vector<4x1xf32>, vector<4x127xf32> -> vector<4x128xf32>
    %c0_23 = arith.constant 0 : index
    %c0_24 = arith.constant 0 : index
    %c0_25 = arith.constant 0 : index
    %30 = vector.load %arg6[%c0_23, %c0_24, %c0_25] : memref<3x1x128xf32, #tpu.memory_space<vmem>>, vector<1x1x128xf32>
    %31 = vector.shape_cast %30 : vector<1x1x128xf32> to vector<1x128xf32>
    %32 = vector.broadcast %31 : vector<1x128xf32> to vector<4x128xf32>
    %33 = arith.mulf %29, %32 : vector<4x128xf32>
    %c0_26 = arith.constant 0 : index
    %c0_27 = arith.constant 0 : index
    %c0_28 = arith.constant 0 : index
    %34 = vector.load %arg5[%c0_26, %c0_27, %c0_28] : memref<3x16x4xf32, #tpu.memory_space<vmem>>, vector<1x16x4xf32>
    %35 = vector.shape_cast %34 : vector<1x16x4xf32> to vector<16x4xf32>
    %cst_29 = arith.constant dense<0.000000e+00> : vector<16x128xf32>
    %36 = tpu.matmul %35, %33, %cst_29 {dimension_numbers = #tpu.dot_dimension_numbers<[1], [0], [0], [1], [0, 0, 1, 1], [], []>} : vector<16x4xf32>, vector<4x128xf32>, vector<16x128xf32> -> vector<16x128xf32>
    %37 = arith.addf %26, %36 : vector<16x128xf32>
    %c1 = arith.constant 1 : index
    %c0_30 = arith.constant 0 : index
    %c0_31 = arith.constant 0 : index
    %38 = vector.load %arg6[%c1, %c0_30, %c0_31] : memref<3x1x128xf32, #tpu.memory_space<vmem>>, vector<1x1x128xf32>
    %39 = vector.shape_cast %38 : vector<1x1x128xf32> to vector<1x128xf32>
    %40 = vector.broadcast %39 : vector<1x128xf32> to vector<4x128xf32>
    %41 = arith.mulf %25, %40 : vector<4x128xf32>
    %c1_32 = arith.constant 1 : index
    %c0_33 = arith.constant 0 : index
    %c0_34 = arith.constant 0 : index
    %42 = vector.load %arg5[%c1_32, %c0_33, %c0_34] : memref<3x16x4xf32, #tpu.memory_space<vmem>>, vector<1x16x4xf32>
    %43 = vector.shape_cast %42 : vector<1x16x4xf32> to vector<16x4xf32>
    %cst_35 = arith.constant dense<0.000000e+00> : vector<16x128xf32>
    %44 = tpu.matmul %43, %41, %cst_35 {dimension_numbers = #tpu.dot_dimension_numbers<[1], [0], [0], [1], [0, 0, 1, 1], [], []>} : vector<16x4xf32>, vector<4x128xf32>, vector<16x128xf32> -> vector<16x128xf32>
    %45 = arith.addf %37, %44 : vector<16x128xf32>
    %46 = vector.extract_strided_slice %25 {offsets = [0, 1], sizes = [4, 127], strides = [1, 1]} : vector<4x128xf32> to vector<4x127xf32>
    %cst_36 = arith.constant 0.000000e+00 : f32
    %47 = vector.broadcast %cst_36 : f32 to vector<4x1xf32>
    %48 = tpu.concatenate %46, %47 in 1 : vector<4x127xf32>, vector<4x1xf32> -> vector<4x128xf32>
    %c2 = arith.constant 2 : index
    %c0_37 = arith.constant 0 : index
    %c0_38 = arith.constant 0 : index
    %49 = vector.load %arg6[%c2, %c0_37, %c0_38] : memref<3x1x128xf32, #tpu.memory_space<vmem>>, vector<1x1x128xf32>
    %50 = vector.shape_cast %49 : vector<1x1x128xf32> to vector<1x128xf32>
    %51 = vector.broadcast %50 : vector<1x128xf32> to vector<4x128xf32>
    %52 = arith.mulf %48, %51 : vector<4x128xf32>
    %c2_39 = arith.constant 2 : index
    %c0_40 = arith.constant 0 : index
    %c0_41 = arith.constant 0 : index
    %53 = vector.load %arg5[%c2_39, %c0_40, %c0_41] : memref<3x16x4xf32, #tpu.memory_space<vmem>>, vector<1x16x4xf32>
    %54 = vector.shape_cast %53 : vector<1x16x4xf32> to vector<16x4xf32>
    %cst_42 = arith.constant dense<0.000000e+00> : vector<16x128xf32>
    %55 = tpu.matmul %54, %52, %cst_42 {dimension_numbers = #tpu.dot_dimension_numbers<[1], [0], [0], [1], [0, 0, 1, 1], [], []>} : vector<16x4xf32>, vector<4x128xf32>, vector<16x128xf32> -> vector<16x128xf32>
    %56 = arith.addf %45, %55 : vector<16x128xf32>
    %c0_43 = arith.constant 0 : index
    %c16_44 = arith.constant 16 : index
    %c0_45 = arith.constant 0 : index
    %57 = vector.load %arg7[%c0_43, %c16_44, %c0_45] : memref<1x32x128xf32, #tpu.memory_space<vmem>>, vector<1x16x128xf32>
    %58 = vector.shape_cast %57 : vector<1x16x128xf32> to vector<16x128xf32>
    %59 = vector.shape_cast %56 : vector<16x128xf32> to vector<1x16x128xf32>
    tpu.vector_store %arg7[%c0_43, %c16_44, %c0_45], %59 {strides = array<i32>} : memref<1x32x128xf32, #tpu.memory_space<vmem>>, vector<1x16x128xf32>,
    return
  }
  func.func @transform_0(%arg0: i32, %arg1: i32) -> (i32, i32, i32) {
    %c0_i32 = arith.constant 0 : i32
    %c0_i32_0 = arith.constant 0 : i32
    return %arg0, %c0_i32, %arg1 : i32, i32, i32
  }
  func.func @transform_1(%arg0: i32, %arg1: i32) -> (i32, i32, i32) {
    %c0_i32 = arith.constant 0 : i32
    %c0_i32_0 = arith.constant 0 : i32
    return %arg0, %arg1, %c0_i32 : i32, i32, i32
  }
  func.func @transform_2(%arg0: i32, %arg1: i32) -> (i32, i32) {
    %c0_i32 = arith.constant 0 : i32
    %c0_i32_0 = arith.constant 0 : i32
    %c0_i32_1 = arith.constant 0 : i32
    return %c0_i32, %c0_i32_0 : i32, i32
  }
  func.func @transform_3(%arg0: i32, %arg1: i32) -> (i32, i32, i32) {
    %c0_i32 = arith.constant 0 : i32
    %c0_i32_0 = arith.constant 0 : i32
    %c0_i32_1 = arith.constant 0 : i32
    %c0_i32_2 = arith.constant 0 : i32
    return %c0_i32, %c0_i32_0, %c0_i32_1 : i32, i32, i32
  }
  func.func @transform_4(%arg0: i32, %arg1: i32) -> (i32, i32, i32) {
    %c0_i32 = arith.constant 0 : i32
    %c0_i32_0 = arith.constant 0 : i32
    %c0_i32_1 = arith.constant 0 : i32
    %c0_i32_2 = arith.constant 0 : i32
    return %c0_i32, %c0_i32_0, %c0_i32_1 : i32, i32, i32
  }
  func.func @transform_5(%arg0: i32, %arg1: i32) -> (i32, i32, i32) {
    %c0_i32 = arith.constant 0 : i32
    %c0_i32_0 = arith.constant 0 : i32
    return %arg0, %c0_i32, %arg1 : i32, i32, i32
  }
}

</mosaic_0001>

<bundles_post_ra>
// kernel: tpu_custom_call.1
= control target key start
LH: loop header
LB: loop body
LE: loop exit
PB: predicated region body
PF: predicated region fallthrough
CT: control target
= control target key end

     0   :  { %10 = vsyncpa [#allocation4], 0  ;;  %s1266_s0 = inlined_call_operand.vmem [shape: f32[2,4,128], index: 0, kind: input, shape index: {}]   ;;  %s1267_s1 = inlined_call_operand.vmem [shape: f32[2,32,16], index: 1, kind: input, shape index: {}]   ;;  %s1268_s2 = inlined_call_operand.vmem [shape: f32[16,4], index: 2, kind: input, shape index: {}]   ;;  %s1269_s3 = inlined_call_operand.vmem [shape: f32[3,16,4], index: 3, kind: input, shape index: {}]   ;;  %s1270_s4 = inlined_call_operand.vmem [shape: f32[3,1,128], index: 4, kind: input, shape index: {}]   ;;  %s1271_s5 = inlined_call_operand.hbm [shape: f32[2,32,128], index: 5, kind: output, shape index: {}]  }
   0x1   :  { %12 = vsyncpa [#allocation4 + $0x1], 0  ;;  %s1088_s18 = smov 0   ;;  %s1090_s19 = smov 0  }
   0x2   :  { %s1092_s20 = smov 0   ;;  %s1094_s21 = smov 0  }
   0x3   :  { %s1096_s22 = smov 0   ;;  %s1098_s23 = smov 0  }
   0x4 LB: > { %s827_s24 = sadd.s32 4294967295, %s1044_s23   ;;  %s828_s25 = sadd.s32 4294967294, %s1044_s23   ;;  %s1044_s23 = sphi %s1098_s23, %s18_s23   ;;  %s1040_s22 = sphi %s1096_s22, %s1278_s22   ;;  %s1036_s21 = sphi %s1094_s21, %s1277_s21   ;;  %s1032_s20 = sphi %s1092_s20, %s1276_s20   ;;  %s1028_s19 = sphi %s1090_s19, %s1275_s19   ;;  %s1024_s18 = sphi %s1088_s18, %s1274_s18  }
   0x5   : > { %s30_s26 = sadd.s32 1, %s1040_s22  ;;  %s158_s27 = sadd.s32 1, %s1032_s20 }
   0x6   : > { %p32_p0 = scmp.ge.s32.totalorder %s30_s26, 2  ;;  %p168_p1 = scmp.ne.s32.totalorder %s1032_s20, %s1028_s19 }
   0x7   : > { %p169_p2 = scmp.eq.s32.totalorder %s827_s24, 1  ;;  %p174_p3 = scmp.ne.s32.totalorder %s1028_s19, %s1024_s18 }
   0x8   : > { %s1280_s26 = smov (%p32_p0, %s30_s26), 0  ;;  %p175_p5 = scmp.eq.s32.totalorder %s828_s25, 1 }
   0x9   : > { %p1128_p4 = por %p169_p2, %p168_p1  ;;  %s153_s29 = ssub.s32 %s1040_s22, %s1280_s26 }
   0xa   : > { %p831_p6 = scmp.ge.s32.totalorder %s1044_s23, 1  ;;  %p156_p7 = scmp.eq.s32.totalorder %s153_s29, 0 }
   0xb   : > { %p1135_p8 = por %p175_p5, %p174_p3  ;;  %p225_p9 = scmp.lt.s32.totalorder %s1044_s23, 3 }
   0xc   : > { %s1141_s6 = scalar_select %p156_p7, %s1032_s20, %s158_s27  }
   0xd   : > { %p226_p10 = pnand %p831_p6, %p225_p9 }
   0xe   : > { %p264_p11 = scmp.lt.s32.totalorder (!%p226_p10), %s1036_s21, 1  ;;  %vm376_vm0 = vcmask (!%p226_p10), 125952   ;;  %s1046_s12 = smov (!%p226_p10), 16   ;;  %vm291_vm1 = vcmask (!%p226_p10), 1043456   ;;  %v282_v5 = vld [vmem:[%s1268_s2] sm:$0xff] (!%p226_p10)  ;;  %vm284_vm2 = vcmask (!%p226_p10), 31744  }
   0xf   : > { %229 = sbr.rel (%p226_p10) target bundleno = 520 (0x208), region = 40  ;;  %s1047_s13 = smov (!%p226_p10), 48   ;;  %878 = vmatprep.mubr.msk.f32.mxu0 (!%p226_p10), %vm284_vm2, %v282_v5  ;;  %v283_v6 = vld [vmem:[%s1268_s2 + $0x8] sm:$0xff] (!%p226_p10)  ;;  %vm382_vm3 = vcmask (!%p226_p10), 261252   ;;  %vm388_vm4 = vcmask (!%p226_p10), 388352   ;;  %vm393_vm5 = vcmask (!%p226_p10), 523652  }
  0x10   : > { %s1048_s14 = smov (!%p226_p10), 32   ;;  %s1049_s15 = smov (!%p226_p10), 64   ;;  %vm399_vm6 = vcmask (!%p226_p10), 650752   ;;  %vm404_vm7 = vcmask (!%p226_p10), 786052   ;;  %vm410_vm8 = vcmask (!%p226_p10), 913152   ;;  %vm415_vm9 = vcmask (!%p226_p10), 1048452  }
  0x11   : > { %s1051_s9 = smov (!%p226_p10), 96   ;;  %v432_v13 = vld [vmem:[%s1269_s3] sm:$0xff] (!%p226_p10)  ;;  %v842_v15 = vld [vmem:[%s1269_s3 + $0x10] sm:$0xff] (!%p226_p10)  ;;  %s1053_s24 = smov (!%p226_p10), 127   ;;  %v843_v19 = vld [vmem:[%s1269_s3 + $0x18] sm:$0xff] (!%p226_p10)  ;;  %vm617_vm10 = vcmask (!%p226_p10), 1039360  }
  0x12   : > { %888 = vmatprep.mubr.msk.f32.mxu1 (!%p226_p10), %vm284_vm2, %v432_v13  ;;  %v841_v16 = vld [vmem:[%s1270_s4 + $0x1] ss:$0 sm:$0xff] (!%p226_p10)  ;;  %vm422_vm11 = vcmask (!%p226_p10), 7168   ;;  %v839_v22 = vld [vmem:[%s1270_s4] ss:$0 sm:$0xff] (!%p226_p10)  ;;  %v433_v29 = vld [vmem:[%s1269_s3 + $0x8] sm:$0xff] (!%p226_p10) }
  0x13   : > { %v851_v25 = vld [vmem:[%s1270_s4 + $0x2] ss:$0 sm:$0xff] (!%p226_p10)  ;;  %v853_v32 = vld [vmem:[%s1269_s3 + $0x28] sm:$0xff] (!%p226_p10)  ;;  %s863_s29 = sshll.u32 (!%p226_p10), %s1036_s21, 9 }
  0x14   : > { %v852_v31 = vld [vmem:[%s1269_s3 + $0x20] sm:$0xff] (!%p226_p10) }
  0x16   : > { %s265_s7 = scalar_select %p264_p11, %s1036_s21, 1 }
  0x18   : > { %s862_s8 = sshll.u32 %s265_s7, 5  ;;  %s833_s16 = sshll.u32 %s265_s7, 2 }
  0x19   : > { %s279_s11 = scalar_lea.vmem %s1267_s1, %s862_s8  ;;  %s270_s25 = scalar_lea.vmem %s1266_s0, %s833_s16 }
  0x1a   : > { %v372_v0 = vld [vmem:[%s279_s11] sm:$0xff]  ;;  %v373_v1 = vld [vmem:[%s279_s11 + $0x8] sm:$0xff]  ;;  %v374_v2 = vld [vmem:[%s279_s11 + $0x10] sm:$0xff]  ;;  %s1050_s8 = smov 80  }
  0x1b   : > { %379 = vrot.lane.b32.xlu0 %v372_v0, %s1046_s12  ;;  %377 = vst.msk [vmem:[#allocation2] sm:$0xf] %vm376_vm0, %v372_v0  ;;  %390 = vrot.lane.b32.xlu1 %v373_v1, %s1047_s13  ;;  %v375_v3 = vld [vmem:[%s279_s11 + $0x18] sm:$0xff]  ;;  %v281_v4 = vld [vmem:[%s270_s25] sm:$0xf]  ;;  %s1052_s11 = smov 112  }
  0x1c   : > { %876 = vmatprep.subr.msk.mxu0 %vm291_vm1, %v281_v4  ;;  %s1054_s25 = smov 1   ;;  %s1055_s13 = smov [#allocation3]  }
  0x1d   : > { %877 = vmatpush3.msk.msra.mxu0 %vm291_vm1, %v281_v4 }
  0x1e   : > { %879 = vmatmul.mubr.msk.f32.vlgmr.msra.gmra.mrb[0].mxu0 %vm284_vm2, %v283_v6 }
  0x1f   : > { %385 = vrot.lane.b32.xlu0 %v373_v1, %s1048_s14  ;;  %396 = vrot.lane.b32.xlu1 %v374_v2, %s1049_s15  ;;  %s970_s14 = sshll.u32 %s1055_s13, 4  ;;  %s971_s14 = int_to_ptr.vmem [resolvable:$false] %s970_s14 }
  0x20   : > { %883 = vmatprep.mubr.msk.f32.mxu0 %vm284_vm2, %v842_v15  ;;  %s972_s15 = scalar_lea.vmem %s971_s14, 1024 }
  0x23   : > { %401 = vrot.lane.b32.xlu0 %v374_v2, %s1050_s8  ;;  %407 = vrot.lane.b32.xlu1 %v375_v3, %s1051_s9  ;;  %s261_s8 = sand.u32 1, %s1028_s19  }
  0x24   : > { %s832_s9 = sshll.u32 %s261_s8, 5  ;;  %s1220_s12 = scalar_lea.sflag [#allocation4], %s261_s8 }
  0x25   : > { %s1181_s7 = scalar_lea.vmem [#allocation3], %s832_s9 }
  0x26   : > { %s734_s27 = sshll.u32 %s1181_s7, 4  ;;  %s1209_s27 = int_to_ptr.vmem [resolvable:$true] %s734_s27 }
  0x27   : > { %412 = vrot.lane.b32.xlu0 %v375_v3, %s1052_s11  ;;  %s1214_s11 = scalar_lea.hbm %s1271_s5, %s863_s29  ;;  %s966_s21 = scalar_lea.vmem %s1209_s27, 512 }
  0x28   : > { %p967_p12 = scmp.ne.s32.totalorder %s1209_s27, %s966_s21  ;;  %p973_p1 = scmp.lt.s32.totalorder %s1209_s27, %s971_s14 }
  0x29   : > { %p974_p2 = scmp.lt.s32.totalorder %s972_s15, %s966_s21 }
  0x2a   : > { %p968_p13 = pnand %p967_p12, %p1128_p4 }
  0x2b   : > { %p975_p3 = por %p974_p2, %p973_p1 }
  0x2c   : > { %p969_p0 = pneg %p968_p13 }
  0x2e   : > { %p976_p5 = pnand %p975_p3, %p969_p0 }
  0x8d   : > { %v380_v7 = vpop.permute.xlu0 %379  ;;  %v391_v8 = vpop.permute.xlu1 %390 }
  0x8e   : > { %383 = vst.msk [vmem:[#allocation2 - $0x4] sm:$0xf0] %vm382_vm3, %v380_v7 }
  0x91   : > { %v386_v9 = vpop.permute.xlu0 %385  ;;  %v397_v10 = vpop.permute.xlu1 %396 }
  0x92   : > { %389 = vst.msk [vmem:[#allocation2] sm:$0xf] %vm388_vm4, %v386_v9 }
  0x93   : > { %394 = vst.msk [vmem:[#allocation2 - $0x4] sm:$0xf0] %vm393_vm5, %v391_v8 }
  0x94   : > { %400 = vst.msk [vmem:[#allocation2] sm:$0xf] %vm399_vm6, %v397_v10 }
  0x95   : > { %v402_v11 = vpop.permute.xlu0 %401  ;;  %v408_v12 = vpop.permute.xlu1 %407 }
  0x96   : > { %405 = vst.msk [vmem:[#allocation2 - $0x4] sm:$0xf0] %vm404_vm7, %v402_v11 }
  0x97   : > { %411 = vst.msk [vmem:[#allocation2] sm:$0xf] %vm410_vm8, %v408_v12 }
  0x99   : > { %v413_v14 = vpop.permute.xlu0 %412 }
  0x9a   : > { %416 = vst.msk [vmem:[#allocation2 - $0x4] sm:$0xf0] %vm415_vm9, %v413_v14 }
  0xa1   : > { %v417_v17 = vld [vmem:[#allocation2] sm:$0xf] }
  0xa2   : > { %614 = vrot.lane.b32.xlu0 %v417_v17, %s1053_s24  ;;  %v442_v18 = vmul.f32 %v841_v16, %v417_v17  ;;  %419 = vrot.lane.b32.xlu1 %v417_v17, %s1054_s25 }
  0xa4   : > { %881 = vmatprep.subr.msk.mxu0 %vm291_vm1, %v442_v18 }
  0xa5   : > { %882 = vmatpush3.msk.msra.mxu0 %vm291_vm1, %v442_v18 }
  0xa6   : > { %884 = vmatmul.mubr.msk.f32.vlgmr.msra.gmra.mrb[2].mxu0 %vm284_vm2, %v843_v19 }
  0xf1   : > { %v880_v20 = vpop.f32.mrb[0].mxu0 }
  0xf2   : > { %371 = vst [vmem:[%s1181_s7 + $0x8] sm:$0xff] %v880_v20  ;;  %v361_v21 = vpop.f32.mrb[1].mxu0 }
  0xf3   : > { %370 = vst [vmem:[%s1181_s7] sm:$0xff] %v361_v21 }
 0x114   : > { %v615_v23 = vpop.permute.xlu0 %614  ;;  %v420_v24 = vpop.permute.xlu1 %419 }
 0x115   : > { %v618_v26 = vsel %vm617_vm10, %v615_v23, 0.0  ;;  %v423_v27 = vsel %vm422_vm11, 0.0, %v420_v24 }
 0x116   : > { %v431_v28 = vmul.f32 %v839_v22, %v423_v27  ;;  %v627_v30 = vmul.f32 %v851_v25, %v618_v26 }
 0x118   : > { %886 = vmatprep.subr.msk.mxu1 %vm291_vm1, %v431_v28 }
 0x119   : > { %887 = vmatpush3.msk.msra.mxu1 %vm291_vm1, %v431_v28 }
 0x11a   : > { %889 = vmatmul.mubr.msk.f32.vlgmr.msra.gmra.mrb[0].mxu1 %vm284_vm2, %v433_v29  ;;  %891 = vmatprep.subr.msk.mxu1 %vm291_vm1, %v627_v30 }
 0x11b   : > { %892 = vmatpush3.msk.msra.mxu1 %vm291_vm1, %v627_v30  ;;  %893 = vmatprep.mubr.msk.f32.mxu1 %vm284_vm2, %v852_v31 }
 0x122   : > { %894 = vmatmul.mubr.msk.f32.vlgmr.msra.gmra.mrb[0].mxu1 %vm284_vm2, %v853_v32 }
 0x179   : > { %v885_v33 = vpop.f32.mrb[2].mxu0 }
 0x17a   : > { %v521_v34 = vpop.f32.mrb[3].mxu0 }
 0x1f5   : > { %v895_v35 = vpop.f32.mrb[0].mxu1 }
 0x1f6   : > { %v896_v36 = vadd.f32 %v895_v35, %v885_v33  ;;  %v706_v37 = vpop.f32.mrb[1].mxu1 }
 0x1f7   : > { %v897_v38 = vadd.f32 %v706_v37, %v521_v34 }
 0x1f8   : > { %718 = vst [vmem:[%s1181_s7 + $0x18] sm:$0xff] %v896_v36 }
 0x1f9   : > { %717 = vst [vmem:[%s1181_s7 + $0x10] sm:$0xff] %v897_v38 }
 0x1fa   : > { %979 = shalt.err (!%p976_p5)
}
 0x1fb   : > { %s980_s8 = scalar_lea.hbm %s1214_s11, 512  ;;  %s984_s17 = scalar_lea.hbm %s1271_s5, 1024 }
 0x1fc   : > { %p981_p6 = scmp.ne.s32.totalorder %s1214_s11, %s980_s8  ;;  %p985_p10 = scmp.lt.u32.totalorder %s1214_s11, %s1271_s5 }
 0x1fd   : > { %p986_p11 = scmp.lt.u32.totalorder %s984_s17, %s980_s8  ;;  %p988_p13 = scmp.lt.u32.totalorder %s980_s8, %s1214_s11 }
 0x1fe   : > { %p982_p7 = pnand %p981_p6, %p1128_p4 }
 0x1ff   : > { %p987_p12 = por %p986_p11, %p985_p10 }
 0x200   : > { %p983_p9 = pneg %p982_p7 }
 0x201   : > { %p989_p0 = por %p988_p13, %p987_p12 }
 0x203   : > { %p990_p1 = pnand %p989_p0, %p983_p9 }
 0x205   : > { %993 = shalt.err (!%p990_p1)
}
 0x206   : > { %s1056_s29 = smov 128   ;;  %s1057_s9 = smov 8  }
 0x207   : > { %900 = dma.vmem_to_hbm [thread:$0]  (%p1128_p4), %s1209_s27, 512, %s1214_s11, %s1220_s12, %s1056_s29, %s1056_s29, %s1057_s9  }
 0x208 PF: > { %p906_p2 = scmp.ge.s32.totalorder %s1044_s23, 2  ;;  %s749_s10 = sand.u32 1, %s1024_s18  }
 0x209   : > { %s750_s21 = scalar_lea.sflag [#allocation4], %s749_s10 }
 0x20a   : > { %p903_p3 = pnand %p906_p2, %p1135_p8 }
 0x20c   : > { %1019 = dma.done.wait (!%p903_p3), %s750_s21, 512  }
 0x20d   : > { %1021 = vsyncadd (!%p903_p3), %s750_s21, 4294966784  ;;  %s18_s23 = sadd.s32 1, %s1044_s23   ;;  %s1274_s18 = smov %s1028_s19 }
 0x20e   : > { %p15_p5 = scmp.ge.s32.totalorder %s18_s23, 4   ;;  %s1275_s19 = smov %s1032_s20 }
 0x20f   : > { %s1276_s20 = smov %s1141_s6  ;;  %s1277_s21 = smov %s1040_s22 }
 0x210   : > { %s1278_s22 = smov %s1280_s26  ;;  %17 = sbr.rel (!%p15_p5) target bundleno = 4 (0x4), region = 82 }
 0x217   :  { %755 = vsyncpa [#allocation4], 1 }
 0x218   :  { %757 = vsyncpa [#allocation4 + $0x1], 1 }

</bundles_post_ra>
